<compile_context>
chip_gen: v5e
topology: v5e:2x2
jax: 0.10.0
libtpu: 0.0.40
codegen_flags: <defaults>
</compile_context>

<pallas_src>
import functools

import jax
import jax.numpy as jnp
from jax.experimental import pallas as pl
from jax.experimental.pallas import tpu as pltpu


def _style_layer_kernel(p_ref, s_ref, out_ref, m_acc, dsum_acc, *,
                        hw, tk, inv_hw, inv_chw, ragged, matmul_dtype):
    k = pl.program_id(1)

    @pl.when(k == 0)
    def _():
        m_acc[...] = jnp.zeros_like(m_acc)
        dsum_acc[...] = jnp.zeros_like(dsum_acc)

    p = p_ref[...].astype(jnp.float32)   # [C, TK]
    s = s_ref[...].astype(jnp.float32)   # [C, TK]
    d = p - s                            # VPU
    u = p + s                            # VPU

    if ragged:
        # In-kernel masking of the partial last HW tile (replaces the old
        # wrapper-side jnp.pad, which cost an extra HBM read+write of both
        # inputs).  Both operands are masked so stale/undefined data in the
        # padded VMEM region (possibly NaN/Inf) cannot leak in via 0 * inf.
        lane = jax.lax.broadcasted_iota(jnp.int32, (1, tk), 1)
        valid = (k * tk + lane) < hw
        d = jnp.where(valid, d, 0.0)
        u = jnp.where(valid, u, 0.0)

    # Single MXU matmul per tile: M += u @ d^T.  NT-form dot_general contracts
    # the shared HW tile axis directly — no transposed [TK, C] copy in VMEM.
    m_acc[...] += jax.lax.dot_general(
        u.astype(matmul_dtype), d.astype(matmul_dtype),
        dimension_numbers=(((1,), (1,)), ((), ())),
        preferred_element_type=jnp.float32)

    # Channel-wise partial sums of (p - s) for the 'mean' statistic.
    if tk % 128 == 0:
        # Lane-dense accumulation: pure VPU adds of vreg-aligned 128-wide
        # slices into a (C, 128) scratch; the only cross-lane (XLU) reduce
        # happens at k == last.
        acc = dsum_acc[...]
        for i in range(tk // 128):
            acc = acc + d[:, i * 128:(i + 1) * 128]
        dsum_acc[...] = acc
    else:
        # Single full-extent tile (TK == HW, HW % 128 != 0): exactly one
        # cross-lane reduce for the whole layer — negligible.
        dsum_acc[...] += jnp.sum(d, axis=-1, keepdims=True)

    @pl.when(k == pl.num_programs(1) - 1)
    def _():
        # 'mean' statistic: sum_c (mean_p - mean_s)^2 = sum_c (sum_hw(d)/HW)^2
        ch = jnp.sum(dsum_acc[...], axis=-1, keepdims=True)      # (C, 1)
        mean_loss = (inv_hw * inv_hw) * jnp.sum(ch * ch)

        # 'gram' statistic via G_p - G_s = (u d^T + d u^T) / (2*C*HW):
        #   sum((G_p - G_s)^2) = 0.5 * inv_chw^2 * (sum(M*M) + trace(M @ M))
        # and trace(M @ M) == sum(M * M^T): XLU transpose + VPU reduce,
        # no C^3 MXU matmul and no iota/where diagonal extraction.
        m = m_acc[...]
        gram_loss = 0.5 * (inv_chw * inv_chw) * (jnp.sum(m * m) +
                                                 jnp.sum(m * m.T))

        # Aligned (8, 128) per-batch store; wrapper reads element [0, 0].
        out_ref[...] = jnp.full(out_ref.shape, mean_loss + gram_loss,
                                dtype=out_ref.dtype)


def _vmem_capacity_bytes():
    """Physical VMEM of the local TPU generation (conservative fallbacks)."""
    try:
        cap = int(pltpu.get_tpu_info().vmem_capacity_bytes)
        if cap > 0:
            return cap
    except Exception:
        pass
    try:
        kind = jax.devices()[0].device_kind.lower()
    except Exception:
        kind = ""
    if "v7" in kind:
        return 64 << 20
    return 128 << 20


def _choose_tile_hw(C, HW, itemsize, vmem_cap, tile_hw=None):
    """Pick the HW (contraction) tile size.

    Prefers (1) a single full-extent tile TK == HW, (2) a 128-multiple tile
    that divides HW (no ragged tail), (3) the largest 128-multiple tile that
    fits the generation-aware VMEM budget (ragged tail masked in-kernel).
    """
    if tile_hw is not None:
        if tile_hw >= HW:
            return HW
        assert tile_hw % 128 == 0, "forced tile_hw must be a multiple of 128"
        return tile_hw

    small_vmem = vmem_cap <= (64 << 20)                     # v7x
    budget = (28 << 20) if small_vmem else (64 << 20)       # inputs + d/u temps
    tk_cap = 4096 if small_vmem else 16384
    # Per unit of TK: 2 inputs x 2 pipeline buffers + f32 d/u temporaries.
    bytes_per_tk = C * (4 * itemsize + 2 * 4)
    tk = (budget // bytes_per_tk) // 128 * 128
    tk = max(128, min(tk, tk_cap))
    if tk >= HW:
        return HW                                           # one full-extent tile
    # Prefer a nearby tile that divides HW evenly -> no ragged tail, no masking.
    for cand in range(tk, tk // 2 - 1, -128):
        if cand > 0 and HW % cand == 0:
            return cand
    return tk


def _vmem_limit_bytes(C, TK, itemsize, vmem_cap, ragged):
    small_vmem = vmem_cap <= (64 << 20)                     # v7x
    cap = (48 << 20) if small_vmem else (100 << 20)
    per_step = 4 * C * TK * itemsize                        # 2 inputs x 2 buffers
    per_step += 2 * C * TK * 4                              # f32 d / u temporaries
    if ragged:
        per_step += C * TK * 4                              # mask/select temporaries
    fixed = C * C * 4 + C * 128 * 4 + 8 * 128 * 4           # accumulators + out
    limit = per_step + fixed + (12 << 20)                   # Mosaic internal headroom
    return int(min(max(limit, 32 << 20), cap))


def _style_layer_loss(p, s, *, matmul_dtype=jnp.float32, tile_hw=None):
    """sum over batch of (mean-stat SSE + gram-stat SSE) for one layer (no /B)."""
    assert p.shape == s.shape
    B, C, H, W = p.shape
    HW = H * W
    itemsize = jnp.dtype(p.dtype).itemsize
    vmem_cap = _vmem_capacity_bytes()
    TK = _choose_tile_hw(C, HW, itemsize, vmem_cap, tile_hw)
    num_k = pl.cdiv(HW, TK)
    ragged = (HW % TK) != 0

    # Free contiguous reshape — no jnp.pad, no extra HBM read/write.
    p2 = p.reshape(B, C, HW)
    s2 = s.reshape(B, C, HW)

    inv_hw = 1.0 / HW
    inv_chw = 1.0 / (C * HW)
    dsum_shape = (C, 128) if TK % 128 == 0 else (C, 1)

    kernel = functools.partial(
        _style_layer_kernel, hw=HW, tk=TK, inv_hw=inv_hw, inv_chw=inv_chw,
        ragged=ragged, matmul_dtype=matmul_dtype)

    out = pl.pallas_call(
        kernel,
        out_shape=jax.ShapeDtypeStruct((B, 8, 128), jnp.float32),
        grid_spec=pltpu.PrefetchScalarGridSpec(
            num_scalar_prefetch=0,
            grid=(B, num_k),                        # reduction (k) axis last
            in_specs=[
                pl.BlockSpec((pl.Squeezed(), C, TK), lambda b, k: (b, 0, k)),
                pl.BlockSpec((pl.Squeezed(), C, TK), lambda b, k: (b, 0, k)),
            ],
            out_specs=pl.BlockSpec((pl.Squeezed(), 8, 128),
                                   lambda b, k: (b, 0, 0)),
            scratch_shapes=[
                pltpu.VMEM((C, C), jnp.float32),    # gram-difference accumulator
                pltpu.VMEM(dsum_shape, jnp.float32),  # channel sums of (p - s)
            ],
        ),
        compiler_params=pltpu.CompilerParams(
            dimension_semantics=("parallel", "arbitrary"),
            vmem_limit_bytes=_vmem_limit_bytes(C, TK, itemsize, vmem_cap, ragged),
        ),
    )(p2, s2)
    return jnp.sum(out[:, 0, 0])


def vgg_style_loss(pred_feats, style_feats, layers=(1, 2, 3), *,
                   matmul_dtype=jnp.float32, tile_hw=None):
    """JAX/Pallas equivalent of
    VGGStyleLoss(loss_type='mse', layers=[1,2,3], stats=['mean','gram'], reduction='sum')."""
    total = jnp.float32(0.0)
    for l in layers:
        p = pred_feats[l - 1]
        s = style_feats[l - 1]
        B = p.shape[0]
        # PixelLoss(reduction='sum') divides the summed squared error by len(pred) == B
        total = total + _style_layer_loss(
            p, s, matmul_dtype=matmul_dtype, tile_hw=tile_hw) / B
    return total


def _reference(pred_feats, style_feats, layers=(1, 2, 3)):
    """Pure-JAX reference of the PyTorch forward for verification."""
    def gram(x):
        b, c, h, w = x.shape
        xf = x.reshape(b, c, h * w)
        return jnp.einsum("bcn,bdn->bcd", xf, xf) / (c * h * w)

    loss = jnp.float32(0.0)
    for l in layers:
        p, s = pred_feats[l - 1], style_feats[l - 1]
        B = p.shape[0]
        mp, ms = p.mean((-2, -1)), s.mean((-2, -1))
        loss = loss + jnp.sum((mp - ms) ** 2) / B
        loss = loss + jnp.sum((gram(p) - gram(s)) ** 2) / B
    return loss


if __name__ == "__main__":
    key = jax.random.PRNGKey(0)
    # Small synthetic "VGG feature maps" for layers 1..3 (NCHW).  HW = 144 on
    # layer 2 exercises the full-extent (non-128-multiple) tile path by
    # default and the ragged masked path when tiles are forced to 128.
    shapes = [(2, 8, 16, 16), (2, 16, 12, 12), (2, 32, 4, 4)]
    pred_feats, style_feats = [], []
    for shp in shapes:
        k1, k2, key = jax.random.split(key, 3)
        pred_feats.append(jax.random.normal(k1, shp, dtype=jnp.float32))
        style_feats.append(jax.random.normal(k2, shp, dtype=jnp.float32))

    ref = jax.block_until_ready(_reference(pred_feats, style_feats))

    # Default tiling (single full-extent HW tile per layer at these toy sizes).
    loss = jax.block_until_ready(vgg_style_loss(pred_feats, style_feats))
    assert jnp.allclose(loss, ref, rtol=1e-4, atol=1e-4), (loss, ref)

    # Forced 128-wide HW tiles: exercises multi-step lane-dense accumulation
    # (layer 1, HW=256) and the in-kernel ragged-tail masking (layer 2, HW=144).
    loss_tiled = jax.block_until_ready(
        vgg_style_loss(pred_feats, style_feats, tile_hw=128))
    assert jnp.allclose(loss_tiled, ref, rtol=1e-4, atol=1e-4), (loss_tiled, ref)

    print("KERNEL_OK")
</pallas_src>

<mosaic_0001>
module attributes {stable_mosaic.version = 11 : i64} {
  func.func @_style_layer_kernel(%arg0: i32, %arg1: i32, %arg2: memref<1x8x256xf32, #tpu.memory_space<vmem>>, %arg3: memref<1x8x256xf32, #tpu.memory_space<vmem>>, %arg4: memref<1x8x128xf32, #tpu.memory_space<vmem>>, %arg5: memref<8x8xf32, #tpu.memory_space<vmem>>, %arg6: memref<8x128xf32, #tpu.memory_space<vmem>>) attributes {dimension_semantics = [#tpu.dimension_semantics<parallel>, #tpu.dimension_semantics<arbitrary>], iteration_bounds = array<i64: 2, 1>, scalar_prefetch = 0 : i64, scratch_operands = 2 : i64, tpu.core_type = #tpu.core_type<tc>, window_params = [{transform_indices = @transform_0, window_bounds = array<i64: 1, 8, 256>}, {transform_indices = @transform_1, window_bounds = array<i64: 1, 8, 256>}, {transform_indices = @transform_2, window_bounds = array<i64: 1, 8, 128>}]} {
    %c0_i32 = arith.constant 0 : i32
    %0 = arith.cmpi eq, %arg1, %c0_i32 : i32
    %1 = arith.extui %0 : i1 to i32
    %c0_i32_0 = arith.constant 0 : i32
    %2 = arith.cmpi ne, %1, %c0_i32_0 : i32
    scf.if %2 {
      %cst_16 = arith.constant 0.000000e+00 : f32
      %22 = vector.broadcast %cst_16 : f32 to vector<8x8xf32>
      %c0_17 = arith.constant 0 : index
      %c0_18 = arith.constant 0 : index
      %23 = vector.load %arg5[%c0_17, %c0_18] : memref<8x8xf32, #tpu.memory_space<vmem>>, vector<8x8xf32>
      tpu.vector_store %arg5[%c0_17, %c0_18], %22 {strides = array<i32>} : memref<8x8xf32, #tpu.memory_space<vmem>>, vector<8x8xf32>,
      %cst_19 = arith.constant 0.000000e+00 : f32
      %24 = vector.broadcast %cst_19 : f32 to vector<8x128xf32>
      %c0_20 = arith.constant 0 : index
      %c0_21 = arith.constant 0 : index
      %25 = vector.load %arg6[%c0_20, %c0_21] : memref<8x128xf32, #tpu.memory_space<vmem>>, vector<8x128xf32>
      tpu.vector_store %arg6[%c0_20, %c0_21], %24 {strides = array<i32>} : memref<8x128xf32, #tpu.memory_space<vmem>>, vector<8x128xf32>,
    } else {
    }
    %c0 = arith.constant 0 : index
    %c0_1 = arith.constant 0 : index
    %c0_2 = arith.constant 0 : index
    %3 = vector.load %arg2[%c0, %c0_1, %c0_2] : memref<1x8x256xf32, #tpu.memory_space<vmem>>, vector<1x8x256xf32>
    %4 = vector.shape_cast %3 : vector<1x8x256xf32> to vector<8x256xf32>
    %c0_3 = arith.constant 0 : index
    %c0_4 = arith.constant 0 : index
    %c0_5 = arith.constant 0 : index
    %5 = vector.load %arg3[%c0_3, %c0_4, %c0_5] : memref<1x8x256xf32, #tpu.memory_space<vmem>>, vector<1x8x256xf32>
    %6 = vector.shape_cast %5 : vector<1x8x256xf32> to vector<8x256xf32>
    %7 = arith.subf %4, %6 : vector<8x256xf32>
    %8 = arith.addf %4, %6 : vector<8x256xf32>
    %c0_6 = arith.constant 0 : index
    %c0_7 = arith.constant 0 : index
    %9 = vector.load %arg5[%c0_6, %c0_7] : memref<8x8xf32, #tpu.memory_space<vmem>>, vector<8x8xf32>
    %cst = arith.constant dense<0.000000e+00> : vector<8x8xf32>
    %10 = tpu.matmul %8, %7, %cst {dimension_numbers = #tpu.dot_dimension_numbers<[1], [1], [0], [0], [0, 0, 1, 0], [], []>} : vector<8x256xf32>, vector<8x256xf32>, vector<8x8xf32> -> vector<8x8xf32>
    %11 = arith.addf %9, %10 : vector<8x8xf32>
    %c0_8 = arith.constant 0 : index
    %c0_9 = arith.constant 0 : index
    %12 = vector.load %arg5[%c0_8, %c0_9] : memref<8x8xf32, #tpu.memory_space<vmem>>, vector<8x8xf32>
    tpu.vector_store %arg5[%c0_8, %c0_9], %11 {strides = array<i32>} : memref<8x8xf32, #tpu.memory_space<vmem>>, vector<8x8xf32>,
    %c0_10 = arith.constant 0 : index
    %c0_11 = arith.constant 0 : index
    %13 = vector.load %arg6[%c0_10, %c0_11] : memref<8x128xf32, #tpu.memory_space<vmem>>, vector<8x128xf32>
    %14 = vector.extract_strided_slice %7 {offsets = [0, 0], sizes = [8, 128], strides = [1, 1]} : vector<8x256xf32> to vector<8x128xf32>
    %15 = arith.addf %13, %14 : vector<8x128xf32>
    %16 = vector.extract_strided_slice %7 {offsets = [0, 128], sizes = [8, 128], strides = [1, 1]} : vector<8x256xf32> to vector<8x128xf32>
    %17 = arith.addf %15, %16 : vector<8x128xf32>
    %c0_12 = arith.constant 0 : index
    %c0_13 = arith.constant 0 : index
    %18 = vector.load %arg6[%c0_12, %c0_13] : memref<8x128xf32, #tpu.memory_space<vmem>>, vector<8x128xf32>
    tpu.vector_store %arg6[%c0_12, %c0_13], %17 {strides = array<i32>} : memref<8x128xf32, #tpu.memory_space<vmem>>, vector<8x128xf32>,
    %c0_i32_14 = arith.constant 0 : i32
    %19 = arith.cmpi eq, %arg1, %c0_i32_14 : i32
    %20 = arith.extui %19 : i1 to i32
    %c0_i32_15 = arith.constant 0 : i32
    %21 = arith.cmpi ne, %20, %c0_i32_15 : i32
    scf.if %21 {
      %c0_16 = arith.constant 0 : index
      %c0_17 = arith.constant 0 : index
      %22 = vector.load %arg6[%c0_16, %c0_17] : memref<8x128xf32, #tpu.memory_space<vmem>>, vector<8x128xf32>
      %cst_18 = arith.constant dense<0.000000e+00> : vector<8xf32>
      %23 = vector.multi_reduction <add>, %22, %cst_18 [1] : vector<8x128xf32> to vector<8xf32>
      %24 = vector.shape_cast %23 : vector<8xf32> to vector<8x1xf32>
      %25 = arith.mulf %24, %24 : vector<8x1xf32>
      %26 = vector.shape_cast %25 : vector<8x1xf32> to vector<1x8x1xf32>
      %cst_19 = arith.constant dense<0.000000e+00> : vector<1xf32>
      %27 = vector.multi_reduction <add>, %26, %cst_19 [1, 2] : vector<1x8x1xf32> to vector<1xf32>
      %28 = vector.shape_cast %27 : vector<1xf32> to vector<1x1x1xf32>
      %29 = vector.extract %28[0, 0, 0] : f32 from vector<1x1x1xf32>
      %cst_20 = arith.constant 1.52587891E-5 : f32
      %30 = arith.mulf %cst_20, %29 : f32
      %c0_21 = arith.constant 0 : index
      %c0_22 = arith.constant 0 : index
      %31 = vector.load %arg5[%c0_21, %c0_22] : memref<8x8xf32, #tpu.memory_space<vmem>>, vector<8x8xf32>
      %32 = arith.mulf %31, %31 : vector<8x8xf32>
      %33 = vector.shape_cast %32 : vector<8x8xf32> to vector<1x8x8xf32>
      %cst_23 = arith.constant dense<0.000000e+00> : vector<1xf32>
      %34 = vector.multi_reduction <add>, %33, %cst_23 [1, 2] : vector<1x8x8xf32> to vector<1xf32>
      %35 = vector.shape_cast %34 : vector<1xf32> to vector<1x1x1xf32>
      %36 = vector.extract %35[0, 0, 0] : f32 from vector<1x1x1xf32>
      %37 = tpu.transpose %31, [1, 0] : vector<8x8xf32> -> vector<8x8xf32>
      %38 = arith.mulf %31, %37 : vector<8x8xf32>
      %39 = vector.shape_cast %38 : vector<8x8xf32> to vector<1x8x8xf32>
      %cst_24 = arith.constant dense<0.000000e+00> : vector<1xf32>
      %40 = vector.multi_reduction <add>, %39, %cst_24 [1, 2] : vector<1x8x8xf32> to vector<1xf32>
      %41 = vector.shape_cast %40 : vector<1xf32> to vector<1x1x1xf32>
      %42 = vector.extract %41[0, 0, 0] : f32 from vector<1x1x1xf32>
      %43 = arith.addf %36, %42 : f32
      %cst_25 = arith.constant 1.1920929E-7 : f32
      %44 = arith.mulf %cst_25, %43 : f32
      %45 = arith.addf %30, %44 : f32
      %46 = vector.broadcast %45 : f32 to vector<8x128xf32>
      %c0_26 = arith.constant 0 : index
      %c0_27 = arith.constant 0 : index
      %c0_28 = arith.constant 0 : index
      %47 = vector.load %arg4[%c0_26, %c0_27, %c0_28] : memref<1x8x128xf32, #tpu.memory_space<vmem>>, vector<1x8x128xf32>
      %48 = vector.shape_cast %47 : vector<1x8x128xf32> to vector<8x128xf32>
      %49 = vector.shape_cast %46 : vector<8x128xf32> to vector<1x8x128xf32>
      tpu.vector_store %arg4[%c0_26, %c0_27, %c0_28], %49 {strides = array<i32>} : memref<1x8x128xf32, #tpu.memory_space<vmem>>, vector<1x8x128xf32>,
    } else {
    }
    return
  }
  func.func @transform_0(%arg0: i32, %arg1: i32) -> (i32, i32, i32) {
    %c0_i32 = arith.constant 0 : i32
    %c0_i32_0 = arith.constant 0 : i32
    return %arg0, %c0_i32, %arg1 : i32, i32, i32
  }
  func.func @transform_1(%arg0: i32, %arg1: i32) -> (i32, i32, i32) {
    %c0_i32 = arith.constant 0 : i32
    %c0_i32_0 = arith.constant 0 : i32
    return %arg0, %c0_i32, %arg1 : i32, i32, i32
  }
  func.func @transform_2(%arg0: i32, %arg1: i32) -> (i32, i32, i32) {
    %c0_i32 = arith.constant 0 : i32
    %c0_i32_0 = arith.constant 0 : i32
    %c0_i32_1 = arith.constant 0 : i32
    return %arg0, %c0_i32, %c0_i32_0 : i32, i32, i32
  }
}

</mosaic_0001>

<bundles_post_ra>
// kernel: tpu_custom_call.1
= control target key start
LH: loop header
LB: loop body
LE: loop exit
PB: predicated region body
PF: predicated region fallthrough
CT: control target
= control target key end

     0   :  { %7 = vsyncpa [#allocation5], 0  ;;  %s880_s0 = inlined_call_operand.hbm [shape: f32[2,8,256], index: 0, kind: input, shape index: {}]   ;;  %s881_s1 = inlined_call_operand.hbm [shape: f32[2,8,256], index: 1, kind: input, shape index: {}]   ;;  %s882_s2 = inlined_call_operand.hbm [shape: f32[2,8,128], index: 2, kind: output, shape index: {}]  }
   0x1   :  { %9 = vsyncpa [#allocation5 + $0x1], 0 }
   0x2   :  { %10 = vsyncpa [#allocation8], 0 }
   0x3   :  { %12 = vsyncpa [#allocation8 + $0x1], 0 }
   0x4   :  { %13 = vsyncpa [#allocation6], 0 }
   0x5   :  { %15 = vsyncpa [#allocation6 + $0x1], 0  ;;  %s747_s9 = smov 0   ;;  %s749_s10 = smov 0  }
   0x6   :  { %s751_s11 = smov 0   ;;  %s753_s12 = smov 0  }
   0x7   :  { %s755_s13 = smov 0   ;;  %s757_s14 = smov 0  }
   0x8 LB: > { %s489_s15 = sadd.s32 4294967295, %s729_s14   ;;  %s490_s16 = sadd.s32 4294967294, %s729_s14   ;;  %s729_s14 = sphi %s757_s14, %s21_s14   ;;  %s725_s13 = sphi %s755_s13, %s891_s13   ;;  %s721_s12 = sphi %s753_s12, %s890_s12   ;;  %s717_s11 = sphi %s751_s11, %s889_s11   ;;  %s713_s10 = sphi %s749_s10, %s888_s10   ;;  %s709_s9 = sphi %s747_s9, %s887_s9  }
   0x9   : > { %s33_s17 = sadd.s32 1, %s725_s13  ;;  %s42_s18 = sadd.s32 1, %s717_s11 }
   0xa   : > { %p35_p0 = scmp.ge.s32.totalorder %s33_s17, 2  ;;  %p49_p1 = scmp.ne.s32.totalorder %s717_s11, %s713_s10 }
   0xb   : > { %p50_p2 = scmp.eq.s32.totalorder %s729_s14, 0  ;;  %p55_p3 = scmp.ne.s32.totalorder %s713_s10, %s709_s9 }
   0xc   : > { %s893_s17 = smov (%p35_p0, %s33_s17), 0  ;;  %p56_p5 = scmp.eq.s32.totalorder %s489_s15, 0 }
   0xd   : > { %p788_p4 = por %p50_p2, %p49_p1  ;;  %s37_s20 = ssub.s32 %s725_s13, %s893_s17 }
   0xe   : > { %p107_p6 = scmp.eq.s32.totalorder %s489_s15, 1  ;;  %p40_p7 = scmp.eq.s32.totalorder %s37_s20, 0 }
   0xf   : > { %p794_p8 = por %p56_p5, %p55_p3  ;;  %p113_p10 = scmp.eq.s32.totalorder %s490_s16, 1 }
  0x10   : > { %p798_p9 = por %p107_p6, %p49_p1  ;;  %p492_p12 = scmp.ge.s32.totalorder %s729_s14, 2 }
  0x11   : > { %s803_s23 = scalar_select %p40_p7, %s717_s11, %s42_s18  }
  0x12   : > { %p805_p11 = por %p113_p10, %p55_p3  ;;  %p532_p13 = scmp.lt.s32.totalorder %s729_s14, 2 }
  0x13   : > { %s133_s25 = sand.u32 1, %s717_s11   ;;  %s507_s27 = sshll.u32 %s725_s13, 4 }
  0x14   : > { %s493_s26 = sshll.u32 %s133_s25, 4  ;;  %s144_s30 = scalar_lea.hbm %s880_s0, %s507_s27 }
  0x15   : > { %s137_s3 = scalar_lea.vmem [#allocation4], %s493_s26  ;;  %s146_s5 = sshll.u32 %s144_s30, 4  ;;  %s147_s5 = int_to_ptr.hbm [resolvable:$true] %s146_s5 }
  0x16   : > { %s148_s4 = sshll.u32 %s137_s3, 4  ;;  %p522_p0 = pnand %p532_p13, %p788_p4  ;;  %s149_s4 = int_to_ptr.vmem [resolvable:$true] %s148_s4 }
  0x17   : > { %p499_p1 = scmp.ge.s32.totalorder %s729_s14, 1  ;;  %p175_p2 = scmp.lt.s32.totalorder %s729_s14, 3 }
  0x18   : > { %s134_s6 = scalar_lea.sflag [#allocation5], %s133_s25  ;;  %s166_s15 = scalar_lea.hbm %s881_s1, %s507_s27 }
  0x19   : > { %524 = dma.hbm_to_vmem [thread:$0]  (!%p522_p0), %s147_s5, 256, %s149_s4, %s134_s6  }
  0x1a   : > { %p176_p3 = pnand %p499_p1, %p175_p2  ;;  %s159_s16 = scalar_lea.vmem [#allocation7], %s493_s26 }
  0x1b   : > { %s170_s18 = sshll.u32 %s159_s16, 4  ;;  %s168_s20 = sshll.u32 %s166_s15, 4  ;;  %s171_s18 = int_to_ptr.vmem [resolvable:$true] %s170_s18  ;;  %s169_s20 = int_to_ptr.hbm [resolvable:$true] %s168_s20 }
  0x1c   : > { %s156_s28 = scalar_lea.sflag [#allocation8], %s133_s25  ;;  %179 = sbr.rel (%p176_p3) target bundleno = 537 (0x219), region = 28 }
  0x1d   : > { %527 = dma.hbm_to_vmem [thread:$0]  (!%p522_p0), %s169_s20, 256, %s171_s18, %s156_s28  }
  0x1e   : > { %s824_s19 = sand.u32 (!%p176_p3), 1, %s713_s10  }
  0x1f   : > { %s500_s29 = sshll.u32 (!%p176_p3), %s824_s19, 4  ;;  %s182_s30 = scalar_lea.sflag (!%p176_p3), [#allocation5], %s824_s19 }
  0x20   : > { %s185_s3 = scalar_lea.vmem (!%p176_p3), [#allocation4], %s500_s29 }
  0x21   : > { %696 = dma.done.wait (%p794_p8), %s182_s30, 256  }
  0x22   : > { %698 = vsyncadd (%p794_p8), %s182_s30, 4294967040  ;;  %s192_s26 = scalar_lea.sflag [#allocation8], %s824_s19  ;;  %s195_s25 = scalar_lea.vmem [#allocation7], %s500_s29 }
  0x23   : > { %700 = dma.done.wait (%p794_p8), %s192_s26, 256  }
  0x24   : > { %702 = vsyncadd (%p794_p8), %s192_s26, 4294967040  ;;  %v231_v0 = vld [vmem:[%s185_s3] sm:$0xff]  ;;  %v232_v2 = vld [vmem:[%s185_s3 + $0x8] sm:$0xff]  ;;  %vm228_vm0 = vcmask 64512   ;;  %v731_v9 = vmov 0.0   ;;  %vm294_vm1 = vcmask 7168  }
  0x25   : > { %v233_v1 = vld [vmem:[%s195_s25] sm:$0xff]  ;;  %v234_v4 = vld [vmem:[%s195_s25 + $0x8] sm:$0xff]  ;;  %229 = vst.msk [vmem:[#allocation2] sm:$0xff] %vm228_vm0, %v731_v9  ;;  %s502_s21 = sshll.u32 %s824_s19, 3  ;;  %s504_s4 = sshll.u32 %s721_s12, 3 }
  0x26   : > { %v235_v3 = vsub.f32 %v231_v0, %v233_v1  ;;  %v236_v5 = vsub.f32 %v232_v2, %v234_v4  ;;  %v237_v6 = vadd.f32 %v233_v1, %v231_v0  ;;  %v238_v7 = vadd.f32 %v234_v4, %v232_v2  ;;  %s377_s15 = scalar_lea.hbm %s882_s2, %s504_s4  ;;  %s221_s20 = scalar_lea.vmem [#allocation9], %s502_s21 }
  0x27   : > { %s379_s28 = sshll.u32 %s221_s20, 4  ;;  %s381_s30 = sshll.u32 %s377_s15, 4  ;;  %s380_s28 = int_to_ptr.vmem [resolvable:$true] %s379_s28  ;;  %s382_s30 = int_to_ptr.hbm [resolvable:$true] %s381_s30 }
  0x28   : > { %255 = vmatpush.xpose.msra.mxu0 %v235_v3  ;;  %275 = vmatpush.xpose.msra.mxu1 %v236_v5  ;;  %v285_v8 = vadd.f32 %v236_v5, %v235_v3  ;;  %s367_s26 = scalar_lea.sflag [#allocation6], %s824_s19  ;;  %s657_s12 = sshra.s32 %s382_s30, 4  ;;  %s658_s12 = int_to_ptr.hbm [resolvable:$true] %s657_s12 }
  0x29   : > { %s659_s25 = scalar_lea.hbm %s658_s12, 8  ;;  %s663_s21 = scalar_lea.hbm %s882_s2, 16 }
  0x2a   : > { %291 = vadd.xlane.f32.xlu0 %v285_v8  ;;  %p660_p4 = scmp.ne.s32.totalorder %s658_s12, %s659_s25  ;;  %p664_p7 = scmp.lt.s32.totalorder %s658_s12, %s882_s2 }
  0x2b   : > { %256 = vmatmul.f32.vlgmr.msra.gmra.mxu0 %v237_v6  ;;  %276 = vmatmul.f32.vlgmr.msra.gmra.mxu1 %v238_v7  ;;  %p665_p8 = scmp.lt.s32.totalorder %s663_s21, %s659_s25 }
  0x2c   : > { %v239_v14 = vld [vmem:[#allocation2] sm:$0xff]  ;;  %p661_p5 = pnand %p660_p4, %p798_p9 }
  0x2d   : > { %p666_p10 = por %p665_p8, %p664_p7 }
  0x2e   : > { %p662_p6 = pneg %p661_p5 }
  0x30   : > { %p667_p13 = pnand %p666_p10, %p662_p6 }
  0x9d   : > { %v292_v10 = vpop.xlane.xlu0 %291 }
  0x9e   : > { %v293_v11 = vmul.f32 %v292_v10, %v292_v10 }
  0xa0   : > { %v295_v12 = vsel %vm294_vm1, %v293_v11, 0.0 }
  0xa1   : > { %296 = vadd.xlane.f32.xlu1 %v295_v12 }
  0xa8   : > { %v257_v13 = vpop.f32.mrf.mxu0  ;;  %v277_v15 = vpop.f32.mrf.mxu1 }
  0xa9   : > { %v278_v16 = vadd.f32 %v277_v15, %v257_v13 }
  0xab   : > { %v280_v17 = vadd.f32 %v278_v16, %v239_v14 }
  0xad   : > { %282 = vst.msk [vmem:[#allocation2] sm:$0xff] %vm228_vm0, %v280_v17 }
  0xb4   : > { %v306_v18 = vld [vmem:[#allocation2] sm:$0xff] }
  0xb5   : > { %318 = vxpose.xlu0.b32.start.end [1/1] (short) (narrow) %v306_v18, 8  ;;  %v307_v19 = vmul.f32 %v306_v18, %v306_v18 }
  0xb7   : > { %v308_v20 = vsel %vm228_vm0, %v307_v19, 0.0 }
  0xb8   : > { %309 = vadd.xlane.f32.xlu1 %v308_v20 }
 0x114   : > { %v297_v21 = vpop.xlane.xlu1 %296 }
 0x115   : > { %v298_v22 = vrot.slane %v297_v21, 4 }
 0x117   : > { %v299_v23 = vadd.f32 %v298_v22, %v297_v21 }
 0x119   : > { %v300_v24 = vrot.slane %v299_v23, 2 }
 0x11b   : > { %v301_v25 = vadd.f32 %v300_v24, %v299_v23 }
 0x11d   : > { %v302_v26 = vrot.slane %v301_v25, 1 }
 0x11f   : > { %v303_v27 = vadd.f32 %v302_v26, %v301_v25 }
 0x121   : > { %509 = vpush %v303_v27 }
 0x12b   : > { %v310_v28 = vpop.xlane.xlu1 %309 }
 0x12c   : > { %v311_v29 = vrot.slane %v310_v28, 4 }
 0x12e   : > { %v312_v30 = vadd.f32 %v311_v29, %v310_v28 }
 0x130   : > { %v313_v31 = vrot.slane %v312_v30, 2 }
 0x132   : > { %v314_v32 = vadd.f32 %v313_v31, %v312_v30 }
 0x134   : > { %v315_v33 = vrot.slane %v314_v32, 1 }
 0x136   : > { %v316_v34 = vadd.f32 %v315_v33, %v314_v32 }
 0x138   : > { %511 = vpush %v316_v34 }
 0x152   : > { %s510_s27 = spop %509 }
 0x153   : > { %s305_s18 = smul.f32 1.5258789e-05, %s510_s27 }
 0x159   : > { %v334_v35 = vpop.trf.xlu0 }
 0x15a   : > { %v350_v36 = vmul.f32 %v334_v35, %v306_v18 }
 0x15c   : > { %v351_v37 = vsel %vm228_vm0, %v350_v36, 0.0 }
 0x15d   : > { %352 = vadd.xlane.f32.xlu2 %v351_v37 }
 0x169   : > { %s512_s5 = spop %511 }
 0x1d0   : > { %v353_v38 = vpop.xlane.xlu2 %352 }
 0x1d1   : > { %v354_v39 = vrot.slane %v353_v38, 4 }
 0x1d3   : > { %v355_v40 = vadd.f32 %v354_v39, %v353_v38 }
 0x1d5   : > { %v356_v41 = vrot.slane %v355_v40, 2 }
 0x1d7   : > { %v357_v42 = vadd.f32 %v356_v41, %v355_v40 }
 0x1d9   : > { %v358_v43 = vrot.slane %v357_v42, 1 }
 0x1db   : > { %v359_v44 = vadd.f32 %v358_v43, %v357_v42 }
 0x1dd   : > { %513 = vpush %v359_v44 }
 0x20e   : > { %s514_s6 = spop %513 }
 0x20f   : > { %s361_s16 = sadd.f32 %s514_s6, %s512_s5 }
 0x211   : > { %s362_s29 = smul.f32 1.1920929e-07, %s361_s16 }
 0x213   : > { %s363_s3 = sadd.f32 %s362_s29, %s305_s18 }
 0x215   : > { %v364_v45 = vstv %s363_s3 }
 0x216   : > { %365 = vst [vmem:[%s221_s20] sm:$0xff] %v364_v45 }
 0x217   : > { %670 = shalt.err (!%p667_p13)
}
 0x218   : > { %519 = dma.vmem_to_hbm [thread:$0]  (%p798_p9), %s380_s28, 128, %s382_s30, %s367_s26  }
 0x219 PF: > { %s393_s19 = sand.u32 1, %s709_s9   ;;  %p529_p0 = pnand %p492_p12, %p805_p11 }
 0x21a   : > { %s394_s7 = scalar_lea.sflag [#allocation6], %s393_s19 }
 0x21b   : > { %p530_p1 = pneg %p529_p0 }
 0x21d   : > { %704 = dma.done.wait (%p530_p1), %s394_s7, 128  }
 0x21e   : > { %706 = vsyncadd (%p530_p1), %s394_s7, 4294967168  ;;  %s21_s14 = sadd.s32 1, %s729_s14   ;;  %s887_s9 = smov %s713_s10 }
 0x21f   : > { %p18_p2 = scmp.ge.s32.totalorder %s21_s14, 4   ;;  %s888_s10 = smov %s717_s11 }
 0x220   : > { %s889_s11 = smov %s803_s23  ;;  %s890_s12 = smov %s725_s13 }
 0x221   : > { %s891_s13 = smov %s893_s17  ;;  %20 = sbr.rel (!%p18_p2) target bundleno = 8 (0x8), region = 94 }
 0x226   :  { %400 = vsyncpa [#allocation5], 1 }
 0x227   :  { %402 = vsyncpa [#allocation5 + $0x1], 1 }
 0x228   :  { %403 = vsyncpa [#allocation8], 1 }
 0x229   :  { %405 = vsyncpa [#allocation8 + $0x1], 1 }
 0x22a   :  { %406 = vsyncpa [#allocation6], 1 }
 0x22b   :  { %408 = vsyncpa [#allocation6 + $0x1], 1 }

</bundles_post_ra>
